<compile_context>
chip_gen: v6e
topology: v6e:2x2x1
jax: 0.10.0
libtpu: 0.0.40
codegen_flags: <defaults>
</compile_context>

<pallas_src>
import jax
import jax.numpy as jnp
from jax.experimental import pallas as pl
from jax.experimental.pallas import tpu as pltpu
from functools import partial


def _round_up(n, m):
    return ((n + m - 1) // m) * m


def _mlp_kernel(n_hidden, x_ref, w_in_ref, b_in_ref, wh_ref, bh_ref,
                w_out_ref, b_out_ref, o_ref):
    # x_ref: (2, TB) -- batch on lanes, the 2 input features on sublanes.
    x = x_ref[...]
    w_in = w_in_ref[...]                     # (width, 2)

    # Input layer (K=2): two broadcast FMAs on the VPU instead of an MXU pass.
    h = (w_in[:, 0:1] * x[0:1, :]            # (width,1)*(1,TB) -> (width,TB)
         + w_in[:, 1:2] * x[1:2, :]
         + b_in_ref[...])                    # (width,1) broadcasts over lanes
    h = jnp.maximum(h, 0.0)

    # Hidden layers on the MXU: (width,width) @ (width,TB); weights resident.
    # Static unroll is fine for small depth (gives the LLO scheduler visibility).
    for l in range(n_hidden):
        h = jnp.dot(wh_ref[l], h, preferred_element_type=jnp.float32) + bh_ref[l]
        h = jnp.maximum(h, 0.0)

    # Output layer (N=1): VPU multiply + cross-sublane (XLU) reduce,
    # stored lane-dense as a (1, TB) row.
    o_ref[...] = (h * w_out_ref[...]).sum(axis=0, keepdims=True) + b_out_ref[...]


def net_relu_forward(x, params, depth):
    """Forward pass of NetRelu in a single batch-tiled Pallas kernel.

    x: (B, 2) float32.  Returns (B, 1) float32.
    """
    w_in, b_in, wh, bh, w_out, b_out = params
    B = x.shape[0]
    width = w_in.shape[0]
    n_hidden = depth - 1

    # Pad width to a multiple of 8 (sublane alignment). Padded rows/cols are
    # zero so they contribute nothing (ReLU(0)=0, zero output weights).
    width_p = _round_up(max(width, 8), 8)
    if width_p != width:
        w_in = jnp.zeros((width_p, 2), jnp.float32).at[:width].set(w_in)
        b_in = jnp.zeros((width_p, 1), jnp.float32).at[:width].set(b_in)
        if n_hidden > 0:
            wh = jnp.zeros((n_hidden, width_p, width_p), jnp.float32
                           ).at[:, :width, :width].set(wh)
            bh = jnp.zeros((n_hidden, width_p, 1), jnp.float32
                           ).at[:, :width].set(bh)
        w_out = jnp.zeros((width_p, 1), jnp.float32).at[:width].set(w_out)
    if n_hidden == 0:
        # Dummy (unused) hidden weights so pallas_call never sees 0-size arrays.
        wh = jnp.zeros((1, width_p, width_p), jnp.float32)
        bh = jnp.zeros((1, width_p, 1), jnp.float32)

    # Batch tile: multiple of 128 (lanes). 512 keeps activations at ~16 vregs
    # for width=32 while amortizing per-step overhead; shrink for small batches.
    TB = min(512, _round_up(B, 128))
    B_pad = _round_up(B, TB)
    grid = (B_pad // TB,)

    # Batch-on-lanes layout; zero-pad batch to a multiple of TB (sliced off after).
    x_t = jnp.zeros((2, B_pad), jnp.float32).at[:, :B].set(x.T)

    flops = 2 * B_pad * (2 * width_p + n_hidden * width_p * width_p + width_p)
    bytes_accessed = (x_t.size + w_in.size + b_in.size + wh.size + bh.size
                      + w_out.size + b_out.size + B_pad) * 4
    cost = pl.CostEstimate(flops=flops, transcendentals=0,
                           bytes_accessed=bytes_accessed)

    resident = lambda shape: pl.BlockSpec(shape, lambda i: tuple(0 for _ in shape))

    out_padded = pl.pallas_call(
        partial(_mlp_kernel, n_hidden),
        out_shape=jax.ShapeDtypeStruct((1, B_pad), jnp.float32),
        grid=grid,
        in_specs=[
            pl.BlockSpec((2, TB), lambda i: (0, i)),   # x block, pipelined over batch
            resident(w_in.shape),                      # (width_p, 2)
            resident(b_in.shape),                      # (width_p, 1)
            resident(wh.shape),                        # (n_hidden, width_p, width_p)
            resident(bh.shape),                        # (n_hidden, width_p, 1)
            resident(w_out.shape),                     # (width_p, 1)
            resident(b_out.shape),                     # (1, 1)
        ],
        out_specs=pl.BlockSpec((1, TB), lambda i: (0, i)),  # lane-dense output row
        compiler_params=pltpu.CompilerParams(
            dimension_semantics=("parallel",),        # shard batch across TCs
            vmem_limit_bytes=32 * 1024 * 1024,
        ),
        cost_estimate=cost,
    )(x_t, w_in, b_in, wh, bh, w_out, b_out)

    return out_padded.reshape(B_pad, 1)[:B]


def init_params(key, width, depth):
    """Deterministic init mimicking torch.nn.Linear's U(-1/sqrt(fan_in), +1/sqrt(fan_in)).

    Weights are stored PyTorch-style (out_features, in_features); biases as (out, 1).
    w_out is stored transposed as (width, 1) for the in-kernel VPU reduction.
    """
    ks = jax.random.split(key, 6)

    def uni(k, shape, fan_in):
        bound = 1.0 / jnp.sqrt(jnp.float32(fan_in))
        return jax.random.uniform(k, shape, jnp.float32, -bound, bound)

    w_in = uni(ks[0], (width, 2), 2)
    b_in = uni(ks[1], (width, 1), 2)
    wh = uni(ks[2], (depth - 1, width, width), width)
    bh = uni(ks[3], (depth - 1, width, 1), width)
    w_out = uni(ks[4], (width, 1), width)
    b_out = uni(ks[5], (1, 1), width)
    return w_in, b_in, wh, bh, w_out, b_out


def reference_forward(x, params):
    """Pure-JAX reference matching the PyTorch semantics (x: (B, 2))."""
    w_in, b_in, wh, bh, w_out, b_out = params
    h = jnp.maximum(x @ w_in.T + b_in[:, 0], 0.0)
    for l in range(wh.shape[0]):
        h = jnp.maximum(h @ wh[l].T + bh[l, :, 0], 0.0)
    return h @ w_out + b_out[0]


if __name__ == "__main__":
    WIDTH = 32
    DEPTH = 3   # 1 input layer + (DEPTH-1) hidden layers + 1 output layer
    BATCH = 8

    key = jax.random.PRNGKey(0)
    k_x, k_p = jax.random.split(key)

    x = jax.random.normal(k_x, (BATCH, 2), jnp.float32)
    params = init_params(k_p, WIDTH, DEPTH)

    out = net_relu_forward(x, params, DEPTH)
    out = jax.block_until_ready(out)

    ref = reference_forward(x, params)
    assert out.shape == (BATCH, 1)
    assert jnp.allclose(out, ref, atol=1e-5, rtol=1e-5)

    print("KERNEL_OK")
</pallas_src>

<mosaic_0001>
module attributes {stable_mosaic.version = 11 : i64} {
  func.func @_mlp_kernel(%arg0: i32, %arg1: memref<2x128xf32, #tpu.memory_space<vmem>>, %arg2: memref<32x2xf32, #tpu.memory_space<vmem>>, %arg3: memref<32x1xf32, #tpu.memory_space<vmem>>, %arg4: memref<2x32x32xf32, #tpu.memory_space<vmem>>, %arg5: memref<2x32x1xf32, #tpu.memory_space<vmem>>, %arg6: memref<32x1xf32, #tpu.memory_space<vmem>>, %arg7: memref<1x1xf32, #tpu.memory_space<vmem>>, %arg8: memref<1x128xf32, #tpu.memory_space<vmem>>) attributes {dimension_semantics = [#tpu.dimension_semantics<parallel>], iteration_bounds = array<i64: 1>, scalar_prefetch = 0 : i64, scratch_operands = 0 : i64, tpu.core_type = #tpu.core_type<tc>, window_params = [{transform_indices = @transform_0, window_bounds = array<i64: 2, 128>}, {pipeline_mode = #tpu.pipeline_mode<synchronous>, transform_indices = @transform_1, window_bounds = array<i64: 32, 2>}, {pipeline_mode = #tpu.pipeline_mode<synchronous>, transform_indices = @transform_2, window_bounds = array<i64: 32, 1>}, {pipeline_mode = #tpu.pipeline_mode<synchronous>, transform_indices = @transform_3, window_bounds = array<i64: 2, 32, 32>}, {pipeline_mode = #tpu.pipeline_mode<synchronous>, transform_indices = @transform_4, window_bounds = array<i64: 2, 32, 1>}, {pipeline_mode = #tpu.pipeline_mode<synchronous>, transform_indices = @transform_5, window_bounds = array<i64: 32, 1>}, {pipeline_mode = #tpu.pipeline_mode<synchronous>, transform_indices = @transform_6, window_bounds = array<i64: 1, 1>}, {transform_indices = @transform_7, window_bounds = array<i64: 1, 128>}]} {
    %c0 = arith.constant 0 : index
    %c0_0 = arith.constant 0 : index
    %0 = vector.load %arg1[%c0, %c0_0] : memref<2x128xf32, #tpu.memory_space<vmem>>, vector<2x128xf32>
    %c0_1 = arith.constant 0 : index
    %c0_2 = arith.constant 0 : index
    %1 = vector.load %arg2[%c0_1, %c0_2] : memref<32x2xf32, #tpu.memory_space<vmem>>, vector<32x2xf32>
    %2 = vector.extract_strided_slice %1 {offsets = [0, 0], sizes = [32, 1], strides = [1, 1]} : vector<32x2xf32> to vector<32x1xf32>
    %3 = vector.extract_strided_slice %0 {offsets = [0, 0], sizes = [1, 128], strides = [1, 1]} : vector<2x128xf32> to vector<1x128xf32>
    %4 = vector.broadcast %2 : vector<32x1xf32> to vector<32x128xf32>
    %5 = vector.broadcast %3 : vector<1x128xf32> to vector<32x128xf32>
    %6 = arith.mulf %4, %5 : vector<32x128xf32>
    %7 = vector.extract_strided_slice %1 {offsets = [0, 1], sizes = [32, 1], strides = [1, 1]} : vector<32x2xf32> to vector<32x1xf32>
    %8 = vector.extract_strided_slice %0 {offsets = [1, 0], sizes = [1, 128], strides = [1, 1]} : vector<2x128xf32> to vector<1x128xf32>
    %9 = vector.broadcast %7 : vector<32x1xf32> to vector<32x128xf32>
    %10 = vector.broadcast %8 : vector<1x128xf32> to vector<32x128xf32>
    %11 = arith.mulf %9, %10 : vector<32x128xf32>
    %12 = arith.addf %6, %11 : vector<32x128xf32>
    %c0_3 = arith.constant 0 : index
    %c0_4 = arith.constant 0 : index
    %13 = vector.load %arg3[%c0_3, %c0_4] : memref<32x1xf32, #tpu.memory_space<vmem>>, vector<32x1xf32>
    %14 = vector.broadcast %13 : vector<32x1xf32> to vector<32x128xf32>
    %15 = arith.addf %12, %14 : vector<32x128xf32>
    %cst = arith.constant 0.000000e+00 : f32
    %16 = vector.broadcast %cst : f32 to vector<32x128xf32>
    %17 = arith.maximumf %15, %16 : vector<32x128xf32>
    %c0_5 = arith.constant 0 : index
    %c0_6 = arith.constant 0 : index
    %c0_7 = arith.constant 0 : index
    %18 = vector.load %arg4[%c0_5, %c0_6, %c0_7] : memref<2x32x32xf32, #tpu.memory_space<vmem>>, vector<1x32x32xf32>
    %19 = vector.shape_cast %18 : vector<1x32x32xf32> to vector<32x32xf32>
    %cst_8 = arith.constant dense<0.000000e+00> : vector<32x128xf32>
    %20 = tpu.matmul %19, %17, %cst_8 {dimension_numbers = #tpu.dot_dimension_numbers<[1], [0], [0], [1], [0, 0, 1, 1], [], []>} : vector<32x32xf32>, vector<32x128xf32>, vector<32x128xf32> -> vector<32x128xf32>
    %c0_9 = arith.constant 0 : index
    %c0_10 = arith.constant 0 : index
    %c0_11 = arith.constant 0 : index
    %21 = vector.load %arg5[%c0_9, %c0_10, %c0_11] : memref<2x32x1xf32, #tpu.memory_space<vmem>>, vector<1x32x1xf32>
    %22 = vector.shape_cast %21 : vector<1x32x1xf32> to vector<32x1xf32>
    %23 = vector.broadcast %22 : vector<32x1xf32> to vector<32x128xf32>
    %24 = arith.addf %20, %23 : vector<32x128xf32>
    %cst_12 = arith.constant 0.000000e+00 : f32
    %25 = vector.broadcast %cst_12 : f32 to vector<32x128xf32>
    %26 = arith.maximumf %24, %25 : vector<32x128xf32>
    %c1 = arith.constant 1 : index
    %c0_13 = arith.constant 0 : index
    %c0_14 = arith.constant 0 : index
    %27 = vector.load %arg4[%c1, %c0_13, %c0_14] : memref<2x32x32xf32, #tpu.memory_space<vmem>>, vector<1x32x32xf32>
    %28 = vector.shape_cast %27 : vector<1x32x32xf32> to vector<32x32xf32>
    %cst_15 = arith.constant dense<0.000000e+00> : vector<32x128xf32>
    %29 = tpu.matmul %28, %26, %cst_15 {dimension_numbers = #tpu.dot_dimension_numbers<[1], [0], [0], [1], [0, 0, 1, 1], [], []>} : vector<32x32xf32>, vector<32x128xf32>, vector<32x128xf32> -> vector<32x128xf32>
    %c1_16 = arith.constant 1 : index
    %c0_17 = arith.constant 0 : index
    %c0_18 = arith.constant 0 : index
    %30 = vector.load %arg5[%c1_16, %c0_17, %c0_18] : memref<2x32x1xf32, #tpu.memory_space<vmem>>, vector<1x32x1xf32>
    %31 = vector.shape_cast %30 : vector<1x32x1xf32> to vector<32x1xf32>
    %32 = vector.broadcast %31 : vector<32x1xf32> to vector<32x128xf32>
    %33 = arith.addf %29, %32 : vector<32x128xf32>
    %cst_19 = arith.constant 0.000000e+00 : f32
    %34 = vector.broadcast %cst_19 : f32 to vector<32x128xf32>
    %35 = arith.maximumf %33, %34 : vector<32x128xf32>
    %c0_20 = arith.constant 0 : index
    %c0_21 = arith.constant 0 : index
    %36 = vector.load %arg6[%c0_20, %c0_21] : memref<32x1xf32, #tpu.memory_space<vmem>>, vector<32x1xf32>
    %37 = vector.broadcast %36 : vector<32x1xf32> to vector<32x128xf32>
    %38 = arith.mulf %35, %37 : vector<32x128xf32>
    %cst_22 = arith.constant dense<0.000000e+00> : vector<128xf32>
    %39 = vector.multi_reduction <add>, %38, %cst_22 [0] : vector<32x128xf32> to vector<128xf32>
    %40 = vector.shape_cast %39 : vector<128xf32> to vector<1x128xf32>
    %c0_23 = arith.constant 0 : index
    %c0_24 = arith.constant 0 : index
    %41 = vector.load %arg7[%c0_23, %c0_24] : memref<1x1xf32, #tpu.memory_space<vmem>>, vector<1x1xf32>
    %42 = vector.broadcast %41 : vector<1x1xf32> to vector<1x128xf32>
    %43 = arith.addf %40, %42 : vector<1x128xf32>
    %c0_25 = arith.constant 0 : index
    %c0_26 = arith.constant 0 : index
    %44 = vector.load %arg8[%c0_25, %c0_26] : memref<1x128xf32, #tpu.memory_space<vmem>>, vector<1x128xf32>
    tpu.vector_store %arg8[%c0_25, %c0_26], %43 {strides = array<i32>} : memref<1x128xf32, #tpu.memory_space<vmem>>, vector<1x128xf32>,
    return
  }
  func.func @transform_0(%arg0: i32) -> (i32, i32) {
    %c0_i32 = arith.constant 0 : i32
    %c0_i32_0 = arith.constant 0 : i32
    return %c0_i32, %arg0 : i32, i32
  }
  func.func @transform_1(%arg0: i32) -> (i32, i32) {
    %c0_i32 = arith.constant 0 : i32
    %c0_i32_0 = arith.constant 0 : i32
    %c0_i32_1 = arith.constant 0 : i32
    return %c0_i32, %c0_i32_0 : i32, i32
  }
  func.func @transform_2(%arg0: i32) -> (i32, i32) {
    %c0_i32 = arith.constant 0 : i32
    %c0_i32_0 = arith.constant 0 : i32
    %c0_i32_1 = arith.constant 0 : i32
    return %c0_i32, %c0_i32_0 : i32, i32
  }
  func.func @transform_3(%arg0: i32) -> (i32, i32, i32) {
    %c0_i32 = arith.constant 0 : i32
    %c0_i32_0 = arith.constant 0 : i32
    %c0_i32_1 = arith.constant 0 : i32
    %c0_i32_2 = arith.constant 0 : i32
    return %c0_i32, %c0_i32_0, %c0_i32_1 : i32, i32, i32
  }
  func.func @transform_4(%arg0: i32) -> (i32, i32, i32) {
    %c0_i32 = arith.constant 0 : i32
    %c0_i32_0 = arith.constant 0 : i32
    %c0_i32_1 = arith.constant 0 : i32
    %c0_i32_2 = arith.constant 0 : i32
    return %c0_i32, %c0_i32_0, %c0_i32_1 : i32, i32, i32
  }
  func.func @transform_5(%arg0: i32) -> (i32, i32) {
    %c0_i32 = arith.constant 0 : i32
    %c0_i32_0 = arith.constant 0 : i32
    %c0_i32_1 = arith.constant 0 : i32
    return %c0_i32, %c0_i32_0 : i32, i32
  }
  func.func @transform_6(%arg0: i32) -> (i32, i32) {
    %c0_i32 = arith.constant 0 : i32
    %c0_i32_0 = arith.constant 0 : i32
    %c0_i32_1 = arith.constant 0 : i32
    return %c0_i32, %c0_i32_0 : i32, i32
  }
  func.func @transform_7(%arg0: i32) -> (i32, i32) {
    %c0_i32 = arith.constant 0 : i32
    %c0_i32_0 = arith.constant 0 : i32
    return %c0_i32, %arg0 : i32, i32
  }
}

</mosaic_0001>

<bundles_post_ra>
// kernel: tpu_custom_call.1
= control target key start
LH: loop header
LB: loop body
LE: loop exit
PB: predicated region body
PF: predicated region fallthrough
CT: control target
= control target key end

     0   :  { %s690_s0 = inlined_call_operand.vmem [shape: f32[2,128], index: 0, kind: input, shape index: {}]   ;;  %s691_s1 = inlined_call_operand.vmem [shape: f32[32,2], index: 1, kind: input, shape index: {}]   ;;  %s692_s2 = inlined_call_operand.vmem [shape: f32[32,1], index: 2, kind: input, shape index: {}]   ;;  %s693_s3 = inlined_call_operand.vmem [shape: f32[2,32,32], index: 3, kind: input, shape index: {}]   ;;  %s694_s4 = inlined_call_operand.vmem [shape: f32[2,32,1], index: 4, kind: input, shape index: {}]   ;;  %s695_s5 = inlined_call_operand.vmem [shape: f32[32,1], index: 5, kind: input, shape index: {}]   ;;  %s696_s6 = inlined_call_operand.<no memory space> [shape: f32[1,1], index: 6, kind: input, shape index: {}]   ;;  %s697_s7 = inlined_call_operand.hbm [shape: f32[1,128], index: 7, kind: output, shape index: {}]  }
   0x1   :  { %v12_v0 = vstv %s696_s6 }
   0x2   :  { %13 = vst [vmem:[#allocation2] sm:$0x1] %v12_v0 }
   0x3   :  { %v33_v1 = vld [vmem:[%s691_s1 + $0x18] sm:$0xff]  ;;  %v32_v2 = vld [vmem:[%s691_s1 + $0x10] sm:$0xff]  ;;  %v538_v3 = vmov 1   ;;  %v539_v4 = vmov 0   ;;  %v31_v5 = vld [vmem:[%s691_s1 + $0x8] sm:$0xff] }
   0x4   :  { %509 = vset.pattern.permute.xlu0 %v538_v3  ;;  %510 = vset.pattern.permute.xlu1 %v539_v4 }
   0x5   :  { %75 = vperm.xlu0 %509, %v33_v1   ;;  %46 = vperm.xlu1 %510, %v32_v2  }
   0x9   :  { %511 = vset.pattern.permute.xlu1 %v538_v3  ;;  %67 = vperm.xlu0 %509, %v31_v5  }
   0xa   :  { %71 = vperm.xlu1 %511, %v32_v2  }
   0xb   :  { %14 = vsyncpa [#allocation4], 0  ;;  %v30_v6 = vld [vmem:[%s691_s1] sm:$0xff]  ;;  %v93_v7 = vld [vmem:[%s692_s2 + $0x18] sm:$0xff]  ;;  %vm150_vm0 = vcmask 261120   ;;  %v54_v25 = vlaneseq }
   0xc   :  { %v91_v8 = vld [vmem:[%s692_s2 + $0x8] sm:$0xff]  ;;  %v129_v9 = vld [vmem:[%s694_s4 + $0x18] sm:$0xff]  ;;  %v92_v10 = vld [vmem:[%s692_s2 + $0x10] sm:$0xff] }
   0xd   :  { %513 = vset.pattern.permute.xlu0 %v539_v4  ;;  %v127_v11 = vld [vmem:[%s694_s4 + $0x8] sm:$0xff]  ;;  %v90_v12 = vld [vmem:[%s692_s2] sm:$0xff]  ;;  %v128_v15 = vld [vmem:[%s694_s4 + $0x10] sm:$0xff]  ;;  %v648_v26 = vshrl.u32 %v54_v25, 7 }
   0xe   :  { %512 = vset.pattern.permute.xlu1 %v539_v4  ;;  %51 = vperm.xlu0 %513, %v33_v1   ;;  %v454_v13 = vld [vmem:[%s694_s4 + $0x20] sm:$0xff]  ;;  %v456_v16 = vld [vmem:[%s694_s4 + $0x30] sm:$0xff]  ;;  %v455_v19 = vld [vmem:[%s694_s4 + $0x28] sm:$0xff] }
   0xf   :  { %41 = vperm.xlu1 %512, %v31_v5   ;;  %v122_v14 = vld [vmem:[%s693_s3] sm:$0xff]  ;;  %v385_v20 = vld [vmem:[%s695_s5 + $0x10] sm:$0xff]  ;;  %v457_v21 = vld [vmem:[%s694_s4 + $0x38] sm:$0xff]  ;;  %v80_v29 = vsub.s32 1, %v648_v26  ;;  %v56_v30 = vsub.s32 0, %v648_v26 }
  0x10   :  { %486 = vmatprep.mubr.msk.f32.mxu0 %vm150_vm0, %v122_v14  ;;  %v126_v17 = vld [vmem:[%s694_s4] sm:$0xff]  ;;  %v384_v23 = vld [vmem:[%s695_s5 + $0x8] sm:$0xff]  ;;  %v386_v24 = vld [vmem:[%s695_s5 + $0x18] sm:$0xff] }
  0x11   :  { %v383_v18 = vld [vmem:[%s695_s5] sm:$0xff]  ;;  %v123_v0 = vld [vmem:[%s693_s3 + $0x8] sm:$0xff]  ;;  %v124_v1 = vld [vmem:[%s693_s3 + $0x10] sm:$0xff] }
  0x12   :  { %36 = vperm.xlu0 %513, %v30_v6   ;;  %v420_v22 = vld [vmem:[#allocation2] sm:$0x1]  ;;  %v125_v2 = vld [vmem:[%s693_s3 + $0x18] sm:$0xff] }
  0x13   :  { %111 = vperm.xlu1 %512, %v93_v7   ;;  %v29_v32 = vld [vmem:[%s690_s0] sm:$0x3] }
  0x14   :  { %v81_v34 = vrot.slane %v29_v32, %v80_v29  ;;  %v57_v35 = vrot.slane %v29_v32, %v56_v30 }
  0x16   :  { %101 = vperm.xlu0 %513, %v91_v8  }
  0x17   :  { %514 = vset.pattern.permute.xlu1 %v538_v3  ;;  %v450_v3 = vld [vmem:[%s693_s3 + $0x20] sm:$0xff] }
  0x18   :  { %63 = vperm.xlu1 %514, %v30_v6   ;;  %500 = vmatprep.mubr.msk.f32.mxu1 %vm150_vm0, %v450_v3 }
  0x1a   :  { %147 = vperm.xlu0 %513, %v129_v9  }
  0x1c   :  { %515 = vset.pattern.permute.xlu1 %v539_v4 }
  0x1d   :  { %106 = vperm.xlu1 %515, %v92_v10  }
  0x1e   :  { %137 = vperm.xlu0 %513, %v127_v11  }
  0x21   :  { %96 = vperm.xlu1 %515, %v90_v12  }
  0x22   :  { %264 = vperm.xlu0 %513, %v454_v13  }
  0x25   :  { %142 = vperm.xlu1 %515, %v128_v15  }
  0x26   :  { %274 = vperm.xlu0 %513, %v456_v16  }
  0x29   :  { %132 = vperm.xlu1 %515, %v126_v17  }
  0x2a   :  { %389 = vperm.xlu0 %513, %v383_v18  }
  0x2d   :  { %269 = vperm.xlu1 %515, %v455_v19  }
  0x2e   :  { %399 = vperm.xlu0 %513, %v385_v20   ;;  %v451_v20 = vld [vmem:[%s693_s3 + $0x28] sm:$0xff] }
  0x31   :  { %279 = vperm.xlu1 %515, %v457_v21   ;;  %v452_v21 = vld [vmem:[%s693_s3 + $0x30] sm:$0xff] }
  0x32   :  { %423 = vperm.xlu0 %513, %v420_v22   ;;  %v453_v22 = vld [vmem:[%s693_s3 + $0x38] sm:$0xff]  ;;  %s540_s3 = smov [#allocation3]  }
  0x33   :  { %s438_s29 = sshll.u32 %s540_s3, 4  ;;  %s439_s29 = int_to_ptr.vmem [resolvable:$true] %s438_s29 }
  0x34   :  { %s516_s30 = scalar_lea.vmem %s439_s29, 16  ;;  %s520_s8 = scalar_lea.vmem %s439_s29, 32 }
  0x35   :  { %394 = vperm.xlu1 %515, %v384_v23   ;;  %p517_p0 = scmp.ne.s32.totalorder %s439_s29, %s516_s30  ;;  %p521_p1 = scmp.lt.s32.totalorder %s439_s29, %s439_s29 }
  0x36   :  { %p522_p2 = scmp.lt.s32.totalorder %s520_s8, %s516_s30 }
  0x38   :  { %p523_p3 = por %p522_p2, %p521_p1 }
  0x39   :  { %404 = vperm.xlu1 %515, %v386_v24  }
  0x3a   :  { %p524_p4 = pnand %p523_p3, %p517_p0 }
  0x80   :  { %v47_v27 = vpop.permute.xlu1 %46  ;;  %v76_v28 = vpop.permute.xlu0 %75 }
  0x81   :  { %v85_v36 = vmul.f32 %v81_v34, %v76_v28  ;;  %v60_v49 = vmul.f32 %v57_v35, %v47_v27 }
  0x84   :  { %v68_v31 = vpop.permute.xlu0 %67 }
  0x85   :  { %v72_v33 = vpop.permute.xlu1 %71  ;;  %v83_v46 = vmul.f32 %v81_v34, %v68_v31 }
  0x86   :  { %v84_v45 = vmul.f32 %v81_v34, %v72_v33 }
  0x88   :  { %v88_v54 = vadd.f32 %v84_v45, %v60_v49 }
  0x89   :  { %v52_v37 = vpop.permute.xlu0 %51 }
  0x8a   :  { %v61_v38 = vmul.f32 %v57_v35, %v52_v37  ;;  %v42_v39 = vpop.permute.xlu1 %41 }
  0x8b   :  { %v59_v47 = vmul.f32 %v57_v35, %v42_v39 }
  0x8c   :  { %v89_v40 = vadd.f32 %v85_v36, %v61_v38 }
  0x8d   :  { %v37_v43 = vpop.permute.xlu0 %36  ;;  %v87_v52 = vadd.f32 %v83_v46, %v59_v47 }
  0x8e   :  { %v112_v41 = vpop.permute.xlu1 %111  ;;  %v58_v51 = vmul.f32 %v57_v35, %v37_v43 }
  0x8f   :  { %v117_v42 = vadd.f32 %v112_v41, %v89_v40 }
  0x91   :  { %v121_v44 = vmax.f32 %v117_v42, 0.0  ;;  %v102_v50 = vpop.permute.xlu0 %101 }
  0x92   :  { %v115_v56 = vadd.f32 %v102_v50, %v87_v52 }
  0x93   :  { %v64_v48 = vpop.permute.xlu1 %63  ;;  %478 = vmatprep.subr.mxu0 %v121_v44 }
  0x94   :  { %479 = vmatpush3.msra.mxu0 %v121_v44  ;;  %v82_v53 = vmul.f32 %v81_v34, %v64_v48  ;;  %v119_v61 = vmax.f32 %v115_v56, 0.0 }
  0x95   :  { %v148_v4 = vpop.permute.xlu0 %147 }
  0x96   :  { %v86_v59 = vadd.f32 %v82_v53, %v58_v51 }
  0x98   :  { %v107_v55 = vpop.permute.xlu1 %106 }
  0x99   :  { %v116_v57 = vadd.f32 %v107_v55, %v88_v54  ;;  %v138_v10 = vpop.permute.xlu0 %137 }
  0x9b   :  { %v120_v58 = vmax.f32 %v116_v57, 0.0 }
  0x9c   :  { %v97_v60 = vpop.permute.xlu1 %96 }
  0x9d   :  { %v114_v62 = vadd.f32 %v97_v60, %v86_v59  ;;  %480 = vmatprep.subr.mxu0 %v120_v58  ;;  %v265_v23 = vpop.permute.xlu0 %264 }
  0x9e   :  { %481 = vmatpush3.msra.mxu0 %v120_v58 }
  0x9f   :  { %v118_v63 = vmax.f32 %v114_v62, 0.0  ;;  %482 = vmatprep.subr.mxu0 %v119_v61 }
  0xa0   :  { %483 = vmatpush3.msra.mxu0 %v119_v61  ;;  %v143_v6 = vpop.permute.xlu1 %142 }
  0xa1   :  { %484 = vmatprep.subr.mxu0 %v118_v63  ;;  %v275_v25 = vpop.permute.xlu0 %274 }
  0xa2   :  { %485 = vmatpush3.msra.mxu0 %v118_v63 }
  0xa3   :  { %487 = vmatmul.mubr.msk.f32.vlgmr.msra.gmra.mxu0 %vm150_vm0, %v123_v0 }
  0xa4   :  { %489 = vmatprep.mubr.msk.f32.mxu0 %vm150_vm0, %v124_v1  ;;  %v133_v15 = vpop.permute.xlu1 %132 }
  0xa5   :  { %v390_v33 = vpop.permute.xlu0 %389 }
  0xa7   :  { %490 = vmatmul.mubr.msk.f32.gmra.mxu0 %vm150_vm0, %v125_v2 }
  0xa8   :  { %v270_v24 = vpop.permute.xlu1 %269 }
  0xa9   :  { %v400_v45 = vpop.permute.xlu0 %399 }
  0xac   :  { %v280_v27 = vpop.permute.xlu1 %279 }
  0xad   :  { %v424_v56 = vpop.permute.xlu0 %423 }
  0xae   :  { %v429_v58 = vrot.slane %v424_v56, %v56_v30 }
  0xb0   :  { %v395_v38 = vpop.permute.xlu1 %394 }
  0xb4   :  { %v405_v48 = vpop.permute.xlu1 %404 }
 0x163   :  { %v488_v5 = vpop.f32.mrf.mxu0 }
 0x164   :  { %v235_v12 = vadd.f32 %v488_v5, %v138_v10 }
 0x165   :  { %v229_v7 = vpop.f32.mrf.mxu0 }
 0x166   :  { %v230_v16 = vadd.f32 %v229_v7, %v133_v15  ;;  %v249_v18 = vmax.f32 %v235_v12, 0.0 }
 0x167   :  { %v491_v8 = vpop.f32.mrf.mxu0 }
 0x168   :  { %v245_v9 = vadd.f32 %v491_v8, %v148_v4  ;;  %v248_v19 = vmax.f32 %v230_v16, 0.0 }
 0x169   :  { %v239_v11 = vpop.f32.mrf.mxu0 }
 0x16a   :  { %v251_v13 = vmax.f32 %v245_v9, 0.0  ;;  %v240_v14 = vadd.f32 %v239_v11, %v143_v6 }
 0x16c   :  { %v250_v17 = vmax.f32 %v240_v14, 0.0  ;;  %492 = vmatprep.subr.mxu1 %v251_v13 }
 0x16d   :  { %493 = vmatpush3.msra.mxu1 %v251_v13 }
 0x16e   :  { %494 = vmatprep.subr.mxu1 %v250_v17 }
 0x16f   :  { %495 = vmatpush3.msra.mxu1 %v250_v17 }
 0x170   :  { %496 = vmatprep.subr.mxu1 %v249_v18 }
 0x171   :  { %497 = vmatpush3.msra.mxu1 %v249_v18 }
 0x172   :  { %498 = vmatprep.subr.mxu1 %v248_v19 }
 0x173   :  { %499 = vmatpush3.msra.mxu1 %v248_v19 }
 0x174   :  { %501 = vmatmul.mubr.msk.f32.vlgmr.msra.gmra.mxu1 %vm150_vm0, %v451_v20 }
 0x175   :  { %503 = vmatprep.mubr.msk.f32.mxu1 %vm150_vm0, %v452_v21 }
 0x178   :  { %504 = vmatmul.mubr.msk.f32.gmra.mxu1 %vm150_vm0, %v453_v22 }
 0x234   :  { %v502_v28 = vpop.f32.mrf.mxu1 }
 0x235   :  { %v366_v29 = vadd.f32 %v502_v28, %v270_v24 }
 0x236   :  { %v360_v31 = vpop.f32.mrf.mxu1 }
 0x237   :  { %v361_v32 = vadd.f32 %v360_v31, %v265_v23  ;;  %v380_v35 = vmax.f32 %v366_v29, 0.0 }
 0x238   :  { %v505_v34 = vpop.f32.mrf.mxu1 }
 0x239   :  { %v379_v36 = vmax.f32 %v361_v32, 0.0  ;;  %v376_v37 = vadd.f32 %v505_v34, %v280_v27  ;;  %v408_v42 = vmul.f32 %v395_v38, %v380_v35 }
 0x23a   :  { %v370_v39 = vpop.f32.mrf.mxu1 }
 0x23b   :  { %v407_v40 = vmul.f32 %v390_v33, %v379_v36  ;;  %v371_v41 = vadd.f32 %v370_v39, %v275_v25  ;;  %v382_v43 = vmax.f32 %v376_v37, 0.0 }
 0x23d   :  { %v381_v44 = vmax.f32 %v371_v41, 0.0  ;;  %v411_v46 = vadd.f32 %v408_v42, %v407_v40  ;;  %v410_v49 = vmul.f32 %v405_v48, %v382_v43 }
 0x23f   :  { %v409_v47 = vmul.f32 %v400_v45, %v381_v44 }
 0x241   :  { %v412_v50 = vadd.f32 %v411_v46, %v409_v47 }
 0x243   :  { %v413_v51 = vadd.f32 %v412_v50, %v410_v49 }
 0x245   :  { %v414_v52 = vrot.slane %v413_v51, 4 }
 0x247   :  { %v415_v53 = vadd.f32 %v414_v52, %v413_v51 }
 0x249   :  { %v416_v54 = vrot.slane %v415_v53, 2 }
 0x24b   :  { %v417_v55 = vadd.f32 %v416_v54, %v415_v53 }
 0x24d   :  { %v418_v57 = vrot.slane %v417_v55, 1 }
 0x24f   :  { %v419_v59 = vadd.f32 %v418_v57, %v417_v55 }
 0x251   :  { %v430_v60 = vadd.f32 %v429_v58, %v419_v59 }
 0x253   :  { %431 = vst [vmem:[#allocation3] sm:$0x1] %v430_v60 }
 0x254   :  { %527 = shalt.err (!%p524_p4)
}
 0x255   :  { %441 = dma.vmem_to_hbm [thread:$0]  %s439_s29, 16, %s697_s7, [#allocation4]  }
 0x256   :  { %536 = dma.done.wait [#allocation4], 16  }
 0x257   :  { %537 = vsyncadd [#allocation4], 4294967280 }
 0x258   :  { %445 = vsyncpa [#allocation4], 1 }

</bundles_post_ra>
